<compile_context>
chip_gen: v7x
topology: tpu7x:2x2x1
jax: 0.10.0
libtpu: 0.0.40
codegen_flags: <defaults>
</compile_context>

<pallas_src>
import math
import functools

import jax
import jax.numpy as jnp
from jax import lax
from jax.experimental import pallas as pl
from jax.experimental.pallas import tpu as pltpu


_VMEM_LIMIT_BYTES = 48 * 1024 * 1024   # > v5e scoped default (16 MiB), < v7x VMEM (64 MiB)

_MATMUL_PARAMS = pltpu.CompilerParams(
    dimension_semantics=("parallel", "parallel", "arbitrary"),
    vmem_limit_bytes=_VMEM_LIMIT_BYTES)

_ELEMWISE_PARAMS = pltpu.CompilerParams(
    dimension_semantics=("parallel",),
    vmem_limit_bytes=_VMEM_LIMIT_BYTES)


# ---------------------------------------------------------------------------
# Kernels
# ---------------------------------------------------------------------------
def _linear_kernel(x_ref, w_ref, b_ref, o_ref, acc_ref):
    """y = x @ w.T + b. K-tiled with an f32 VMEM accumulator.

    Shared by eval mode and the cached-fused-noise training path.
    """
    k = pl.program_id(2)

    @pl.when(k == 0)
    def _init():
        acc_ref[...] = jnp.zeros_like(acc_ref)

    acc_ref[...] += lax.dot_general(
        x_ref[...], w_ref[...],
        dimension_numbers=(((1,), (1,)), ((), ())),
        preferred_element_type=jnp.float32)                     # (tm, tn) f32

    @pl.when(k == pl.num_programs(2) - 1)
    def _finalize():
        o_ref[...] = (acc_ref[...] + b_ref[...]).astype(o_ref.dtype)


def _noisy_linear_kernel(x_ref, wmu_ref, wsig_ref, weps_ref, b_ref,
                         o_ref, acc_ref):
    """Streaming variant: noisy weight fused on the VPU inside the matmul.

    Streams 3x the weight bytes from HBM — only useful when the fused weight
    cannot be cached between reset_noise() calls.
    """
    k = pl.program_id(2)

    @pl.when(k == 0)
    def _init():
        acc_ref[...] = jnp.zeros_like(acc_ref)

    w = wmu_ref[...] + wsig_ref[...] * weps_ref[...]            # (tn, tk)
    acc_ref[...] += lax.dot_general(
        x_ref[...], w,
        dimension_numbers=(((1,), (1,)), ((), ())),
        preferred_element_type=jnp.float32)

    @pl.when(k == pl.num_programs(2) - 1)
    def _finalize():
        o_ref[...] = (acc_ref[...] + b_ref[...]).astype(o_ref.dtype)


def _fuse_weight_kernel(wmu_ref, wsig_ref, weps_ref, o_ref):
    """weight = weight_mu + weight_sigma * weight_epsilon (f32 math, cast once).

    Run once per reset_noise(); writes the fused (bf16) weight back to HBM so
    every subsequent forward only streams 1x weight bytes.
    """
    o_ref[...] = (wmu_ref[...] + wsig_ref[...] * weps_ref[...]).astype(o_ref.dtype)


# ---------------------------------------------------------------------------
# Tiling / padding helpers
# ---------------------------------------------------------------------------
def _round_up(x, m):
    return ((x + m - 1) // m) * m


def _pick_tile(padded_dim, cap):
    """Largest multiple of 128 that divides padded_dim and is <= cap."""
    best = 128
    t = 128
    while t <= min(padded_dim, cap):
        if padded_dim % t == 0:
            best = t
        t += 128
    return best


def _forward_tiling(b, kp, np_):
    """Tile sizes for a (b, kp) x (np_, kp) matmul with pre-padded weights."""
    tm = min(_round_up(max(b, 1), 16), 256)   # 16: bf16 packs 2 rows / sublane
    bp = _round_up(b, tm)
    tk = _pick_tile(kp, 2048)
    tn = _pick_tile(np_, 512)
    # v7x megacore: a (1, 1, K) grid leaves one TensorCore idle — split the N
    # tile when it stays a multiple of 128 so >= 2 parallel blocks exist.
    if bp // tm == 1 and np_ // tn == 1 and tn % 256 == 0:
        tn //= 2
    return tm, tk, tn, bp


def _pad2(a, rows, cols):
    return jnp.pad(a, ((0, rows - a.shape[0]), (0, cols - a.shape[1])))


# ---------------------------------------------------------------------------
# pallas_call wrappers
# ---------------------------------------------------------------------------
def _linear_call(xp, wp, bp, tm, tk, tn):
    Bp, Kp = xp.shape
    Np = wp.shape[0]
    grid = (Bp // tm, Np // tn, Kp // tk)
    # NOTE: weight blocks (index (j, k)) are re-fetched once per i block; tm is
    # raised to 256 so grid_i == 1 for RL-typical batch sizes.
    # TODO(synk): for very large batches (grid_i > 1), an inner
    # pltpu.emit_pipeline over K keeping a weight j-row resident would cut
    # weight traffic by grid_i.
    return pl.pallas_call(
        _linear_kernel,
        out_shape=jax.ShapeDtypeStruct((Bp, Np), jnp.float32),
        grid_spec=pltpu.PrefetchScalarGridSpec(
            num_scalar_prefetch=0,
            grid=grid,
            in_specs=[
                pl.BlockSpec((tm, tk), lambda i, j, k: (i, k)),   # x
                pl.BlockSpec((tn, tk), lambda i, j, k: (j, k)),   # fused weight
                pl.BlockSpec((1, tn), lambda i, j, k: (0, j)),    # fused bias
            ],
            out_specs=pl.BlockSpec((tm, tn), lambda i, j, k: (i, j)),
            scratch_shapes=[pltpu.VMEM((tm, tn), jnp.float32)],
        ),
        compiler_params=_MATMUL_PARAMS,
    )(xp, wp, bp)


def _noisy_call(xp, wmu, wsig, weps, bias, tm, tk, tn):
    Bp, Kp = xp.shape
    Np = wmu.shape[0]
    grid = (Bp // tm, Np // tn, Kp // tk)
    return pl.pallas_call(
        _noisy_linear_kernel,
        out_shape=jax.ShapeDtypeStruct((Bp, Np), jnp.float32),
        grid_spec=pltpu.PrefetchScalarGridSpec(
            num_scalar_prefetch=0,
            grid=grid,
            in_specs=[
                pl.BlockSpec((tm, tk), lambda i, j, k: (i, k)),   # x
                pl.BlockSpec((tn, tk), lambda i, j, k: (j, k)),   # weight_mu
                pl.BlockSpec((tn, tk), lambda i, j, k: (j, k)),   # weight_sigma
                pl.BlockSpec((tn, tk), lambda i, j, k: (j, k)),   # weight_epsilon
                pl.BlockSpec((1, tn), lambda i, j, k: (0, j)),    # fused bias
            ],
            out_specs=pl.BlockSpec((tm, tn), lambda i, j, k: (i, j)),
            scratch_shapes=[pltpu.VMEM((tm, tn), jnp.float32)],
        ),
        compiler_params=_MATMUL_PARAMS,
    )(xp, wmu, wsig, weps, bias)


def _fuse_weight_call(wmu_p, wsig_p, weps_p, out_dtype):
    Np, Kp = wmu_p.shape
    rows = 128                                 # Np is always a multiple of 128
    spec = pl.BlockSpec((rows, Kp), lambda i: (i, 0))
    return pl.pallas_call(
        _fuse_weight_kernel,
        out_shape=jax.ShapeDtypeStruct((Np, Kp), out_dtype),
        grid_spec=pltpu.PrefetchScalarGridSpec(
            num_scalar_prefetch=0,
            grid=(Np // rows,),
            in_specs=[spec, spec, spec],
            out_specs=spec,
        ),
        compiler_params=_ELEMWISE_PARAMS,
    )(wmu_p, wsig_p, weps_p)


# ---------------------------------------------------------------------------
# Jitted padded forwards (only x pad/cast happens per call)
# ---------------------------------------------------------------------------
@functools.partial(jax.jit, static_argnames=("n_out",))
def _padded_linear_forward(x, w_p, b_p, n_out):
    B, _ = x.shape
    Np, Kp = w_p.shape
    tm, tk, tn, Bp = _forward_tiling(B, Kp, Np)
    xp = _pad2(x.astype(w_p.dtype), Bp, Kp)
    y = _linear_call(xp, w_p, b_p, tm, tk, tn)
    return y[:B, :n_out]


@functools.partial(jax.jit, static_argnames=("n_out",))
def _padded_noisy_forward(x, wmu_p, wsig_p, weps_p, b_p, n_out):
    B, _ = x.shape
    Np, Kp = wmu_p.shape
    tm, tk, tn, Bp = _forward_tiling(B, Kp, Np)
    xp = _pad2(x.astype(wmu_p.dtype), Bp, Kp)
    y = _noisy_call(xp, wmu_p, wsig_p, weps_p, b_p, tm, tk, tn)
    return y[:B, :n_out]


# ---------------------------------------------------------------------------
# Public API
# ---------------------------------------------------------------------------
def prepare_noisy_linear(params, compute_dtype=jnp.bfloat16):
    """Run once per init / reset_noise(): pad, cast and pre-fuse the weights.

    Hoists all weight-side padding/casting out of the per-step forward and
    caches the fused noisy weight (1x weight HBM traffic per forward).
    """
    N, K = params["weight_mu"].shape
    Kp = _round_up(K, 128)
    Np = _round_up(N, 128)

    wmu_p = _pad2(params["weight_mu"].astype(jnp.float32), Np, Kp)
    wsig_p = _pad2(params["weight_sigma"].astype(jnp.float32), Np, Kp)
    weps_p = _pad2(params["weight_epsilon"].astype(jnp.float32), Np, Kp)

    # Fused noisy weight: f32 math in the kernel, single cast on store.
    w_noisy = _fuse_weight_call(wmu_p, wsig_p, weps_p, compute_dtype)
    wmu_c = wmu_p.astype(compute_dtype)

    pad_n = Np - N
    b_noisy = (params["bias_mu"] + params["bias_sigma"] * params["bias_epsilon"])
    b_noisy_p = jnp.pad(b_noisy.astype(jnp.float32), (0, pad_n)).reshape(1, Np)
    b_mu_p = jnp.pad(params["bias_mu"].astype(jnp.float32), (0, pad_n)).reshape(1, Np)

    return {
        # cached training path (default) ------------------------------------
        "w_noisy": w_noisy,                         # (Np, Kp) compute_dtype
        "b_noisy": b_noisy_p,                       # (1, Np) f32
        # eval path ----------------------------------------------------------
        "w_mu": wmu_c,
        "b_mu": b_mu_p,
        # streaming (in-kernel noise fusion) path ------------------------------
        "w_mu_s": wmu_c,
        "w_sig_s": wsig_p.astype(compute_dtype),
        "w_eps_s": weps_p.astype(compute_dtype),
        # static metadata ------------------------------------------------------
        "in_features": int(K),
        "out_features": int(N),
    }


def noisy_linear_forward(x, prepared, training=True):
    """NoisyLinear.forward — cached-fused-noise path (default).

    x: (..., in_features) float32.  Returns (..., out_features) float32.
    """
    assert x.shape[-1] == prepared["in_features"]
    lead = x.shape[:-1]
    x2 = x.reshape((-1, x.shape[-1]))
    if training:
        y = _padded_linear_forward(x2, prepared["w_noisy"], prepared["b_noisy"],
                                   prepared["out_features"])
    else:
        y = _padded_linear_forward(x2, prepared["w_mu"], prepared["b_mu"],
                                   prepared["out_features"])
    return y.reshape(lead + (prepared["out_features"],))


def noisy_linear_forward_streaming(x, prepared):
    """Training forward that fuses mu + sigma*eps on the VPU inside the matmul
    kernel (3x weight HBM traffic). Use only if the fused weight cannot be
    cached between reset_noise() calls."""
    assert x.shape[-1] == prepared["in_features"]
    lead = x.shape[:-1]
    x2 = x.reshape((-1, x.shape[-1]))
    y = _padded_noisy_forward(x2, prepared["w_mu_s"], prepared["w_sig_s"],
                              prepared["w_eps_s"], prepared["b_noisy"],
                              prepared["out_features"])
    return y.reshape(lead + (prepared["out_features"],))


# ---------------------------------------------------------------------------
# Parameter / noise construction (mirrors reset_parameters / reset_noise)
# ---------------------------------------------------------------------------
def _scale_noise(key, size):
    x = jax.random.normal(key, (size,), dtype=jnp.float32)
    return jnp.sign(x) * jnp.sqrt(jnp.abs(x))


def reset_noise(params, key):
    out_features, in_features = params["weight_mu"].shape
    k_in, k_out = jax.random.split(key)
    eps_in = _scale_noise(k_in, in_features)
    eps_out = _scale_noise(k_out, out_features)
    new = dict(params)
    new["weight_epsilon"] = jnp.outer(eps_out, eps_in)
    new["bias_epsilon"] = eps_out
    return new


def init_noisy_linear(key, in_features, out_features, std_init=0.5):
    k_wmu, k_bmu, k_noise = jax.random.split(key, 3)
    mu_range = 1.0 / math.sqrt(in_features)
    params = {
        "weight_mu": jax.random.uniform(
            k_wmu, (out_features, in_features),
            minval=-mu_range, maxval=mu_range, dtype=jnp.float32),
        "weight_sigma": jnp.full(
            (out_features, in_features),
            std_init / math.sqrt(in_features), dtype=jnp.float32),
        "bias_mu": jax.random.uniform(
            k_bmu, (out_features,),
            minval=-mu_range, maxval=mu_range, dtype=jnp.float32),
        "bias_sigma": jnp.full(
            (out_features,), std_init / math.sqrt(out_features), dtype=jnp.float32),
    }
    return reset_noise(params, k_noise)


if __name__ == "__main__":
    key = jax.random.PRNGKey(0)
    k_params, k_x, k_x2 = jax.random.split(key, 3)

    # --- primary check: RL-sized NoisyLinear ------------------------------
    batch, in_features, out_features = 8, 32, 64
    params = init_noisy_linear(k_params, in_features, out_features, std_init=0.5)
    prepared = prepare_noisy_linear(params)      # once per init / reset_noise

    x = jax.random.normal(k_x, (batch, in_features), dtype=jnp.float32)

    y_train = jax.block_until_ready(noisy_linear_forward(x, prepared, training=True))
    y_eval = jax.block_until_ready(noisy_linear_forward(x, prepared, training=False))
    y_stream = jax.block_until_ready(noisy_linear_forward_streaming(x, prepared))

    w_ref = params["weight_mu"] + params["weight_sigma"] * params["weight_epsilon"]
    b_ref = params["bias_mu"] + params["bias_sigma"] * params["bias_epsilon"]
    ref_train = x @ w_ref.T + b_ref
    ref_eval = x @ params["weight_mu"].T + params["bias_mu"]

    assert y_train.shape == (batch, out_features)
    assert jnp.allclose(y_train, ref_train, atol=3e-2, rtol=3e-2)   # bf16 weights
    assert jnp.allclose(y_stream, ref_train, atol=3e-2, rtol=3e-2)
    assert jnp.allclose(y_eval, ref_eval, atol=3e-2, rtol=3e-2)

    # --- secondary check: wider layer exercises the multi-block parallel-N grid
    in2, out2 = 48, 512
    params2 = init_noisy_linear(k_params, in2, out2, std_init=0.5)
    prepared2 = prepare_noisy_linear(params2)
    x2 = jax.random.normal(k_x2, (batch, in2), dtype=jnp.float32)
    y2 = jax.block_until_ready(noisy_linear_forward(x2, prepared2, training=True))
    w2 = params2["weight_mu"] + params2["weight_sigma"] * params2["weight_epsilon"]
    b2 = params2["bias_mu"] + params2["bias_sigma"] * params2["bias_epsilon"]
    assert jnp.allclose(y2, x2 @ w2.T + b2, atol=3e-2, rtol=3e-2)

    print("KERNEL_OK")
</pallas_src>

<mosaic_0001>
module attributes {stable_mosaic.version = 11 : i64} {
  func.func @_fuse_weight_kernel(%arg0: i32, %arg1: memref<128x128xf32, #tpu.memory_space<vmem>>, %arg2: memref<128x128xf32, #tpu.memory_space<vmem>>, %arg3: memref<128x128xf32, #tpu.memory_space<vmem>>, %arg4: memref<128x128xbf16, #tpu.memory_space<vmem>>) attributes {dimension_semantics = [#tpu.dimension_semantics<parallel>], iteration_bounds = array<i64: 1>, scalar_prefetch = 0 : i64, scratch_operands = 0 : i64, tpu.core_type = #tpu.core_type<tc>, window_params = [{transform_indices = @transform_0, window_bounds = array<i64: 128, 128>}, {transform_indices = @transform_1, window_bounds = array<i64: 128, 128>}, {transform_indices = @transform_2, window_bounds = array<i64: 128, 128>}, {transform_indices = @transform_3, window_bounds = array<i64: 128, 128>}]} {
    %c0 = arith.constant 0 : index
    %c0_0 = arith.constant 0 : index
    %0 = vector.load %arg1[%c0, %c0_0] : memref<128x128xf32, #tpu.memory_space<vmem>>, vector<128x128xf32>
    %c0_1 = arith.constant 0 : index
    %c0_2 = arith.constant 0 : index
    %1 = vector.load %arg2[%c0_1, %c0_2] : memref<128x128xf32, #tpu.memory_space<vmem>>, vector<128x128xf32>
    %c0_3 = arith.constant 0 : index
    %c0_4 = arith.constant 0 : index
    %2 = vector.load %arg3[%c0_3, %c0_4] : memref<128x128xf32, #tpu.memory_space<vmem>>, vector<128x128xf32>
    %3 = arith.mulf %1, %2 : vector<128x128xf32>
    %4 = arith.addf %0, %3 : vector<128x128xf32>
    %5 = arith.truncf %4 : vector<128x128xf32> to vector<128x128xbf16>
    %c0_5 = arith.constant 0 : index
    %c0_6 = arith.constant 0 : index
    %6 = vector.load %arg4[%c0_5, %c0_6] : memref<128x128xbf16, #tpu.memory_space<vmem>>, vector<128x128xbf16>
    tpu.vector_store %arg4[%c0_5, %c0_6], %5 {strides = array<i32>} : memref<128x128xbf16, #tpu.memory_space<vmem>>, vector<128x128xbf16>,
    return
  }
  func.func @transform_0(%arg0: i32) -> (i32, i32) {
    %c0_i32 = arith.constant 0 : i32
    %c0_i32_0 = arith.constant 0 : i32
    return %arg0, %c0_i32 : i32, i32
  }
  func.func @transform_1(%arg0: i32) -> (i32, i32) {
    %c0_i32 = arith.constant 0 : i32
    %c0_i32_0 = arith.constant 0 : i32
    return %arg0, %c0_i32 : i32, i32
  }
  func.func @transform_2(%arg0: i32) -> (i32, i32) {
    %c0_i32 = arith.constant 0 : i32
    %c0_i32_0 = arith.constant 0 : i32
    return %arg0, %c0_i32 : i32, i32
  }
  func.func @transform_3(%arg0: i32) -> (i32, i32) {
    %c0_i32 = arith.constant 0 : i32
    %c0_i32_0 = arith.constant 0 : i32
    return %arg0, %c0_i32 : i32, i32
  }
}

</mosaic_0001>

<bundles_post_ra>
// kernel: tpu_custom_call.1
= control target key start
LH: loop header
LB: loop body
LE: loop exit
PB: predicated region body
PF: predicated region fallthrough
CT: control target
= control target key end

     0   :  { %8 = vsyncpa [#allocation3], 0  ;;  %s507_s0 = inlined_call_operand.hbm [shape: f32[128,128], index: 0, kind: input, shape index: {}]   ;;  %s508_s1 = inlined_call_operand.hbm [shape: f32[128,128], index: 1, kind: input, shape index: {}]   ;;  %s509_s2 = inlined_call_operand.hbm [shape: f32[128,128], index: 2, kind: input, shape index: {}]   ;;  %s510_s3 = inlined_call_operand.hbm [shape: bf16[128,128], index: 3, kind: output, shape index: {}]  }
   0x1   :  { %9 = vsyncpa [#allocation6], 0 }
   0x2   :  { %10 = vsyncpa [#allocation4], 0  ;;  %s415_s12 = smov [#allocation5]   ;;  %s416_s14 = smov [#allocation2]  }
   0x3   :  { %s28_s13 = sshll.u32 %s415_s12, 4  ;;  %s16_s15 = sshll.u32 %s416_s14, 4  ;;  %s29_s13 = int_to_ptr.vmem [resolvable:$true] %s28_s13  ;;  %s443_s15 = int_to_ptr.vmem [resolvable:$true] %s16_s15 }
   0x4   :  { %s321_s18 = scalar_lea.hbm %s508_s1, 2048 }
   0x5   :  { %p322_p0 = scmp.ne.s32.totalorder %s508_s1, %s321_s18  ;;  %p325_p1 = scmp.lt.u32.totalorder %s321_s18, %s508_s1 }
   0x7   :  { %p327_p2 = pnand %p325_p1, %p322_p0 }
   0x9   :  { %330 = shalt.err (!%p327_p2)
}
   0xa   :  { %s331_s23 = scalar_lea.vmem %s29_s13, 2048  ;;  %p336_p4 = scmp.lt.s32.totalorder %s29_s13, %s29_s13 }
   0xb   :  { %p332_p3 = scmp.ne.s32.totalorder %s29_s13, %s331_s23  ;;  %p337_p5 = scmp.lt.s32.totalorder %s331_s23, %s331_s23 }
   0xd   :  { %p338_p6 = por %p337_p5, %p336_p4 }
   0xf   :  { %p339_p7 = pnand %p338_p6, %p332_p3 }
  0x11   :  { %342 = shalt.err (!%p339_p7)
}
  0x12   :  { %s417_s24 = smov 128   ;;  %s418_s25 = smov 8  }
  0x13   :  { %34 = dma.hbm_to_vmem [thread:$0]  %s508_s1, 2048, %s29_s13, [#allocation6], %s417_s24, %s417_s24, %s418_s25  }
  0x14   :  { %s343_s30 = scalar_lea.hbm %s507_s0, 2048 }
  0x15   :  { %p344_p8 = scmp.ne.s32.totalorder %s507_s0, %s343_s30  ;;  %p347_p9 = scmp.lt.u32.totalorder %s343_s30, %s507_s0 }
  0x17   :  { %p349_p10 = pnand %p347_p9, %p344_p8 }
  0x19   :  { %352 = shalt.err (!%p349_p10)
}
  0x1a   :  { %s353_s8 = scalar_lea.vmem %s443_s15, 2048  ;;  %p358_p12 = scmp.lt.s32.totalorder %s443_s15, %s443_s15 }
  0x1b   :  { %p354_p11 = scmp.ne.s32.totalorder %s443_s15, %s353_s8  ;;  %p359_p13 = scmp.lt.s32.totalorder %s353_s8, %s353_s8 }
  0x1d   :  { %p360_p0 = por %p359_p13, %p358_p12 }
  0x1f   :  { %p361_p1 = pnand %p360_p0, %p354_p11 }
  0x21   :  { %364 = shalt.err (!%p361_p1)
}
  0x22   :  { %22 = dma.hbm_to_vmem [thread:$0]  %s507_s0, 2048, %s443_s15, [#allocation3], %s417_s24, %s417_s24, %s418_s25  }
  0x23   :  { %s419_s10 = smov [#allocation7]   ;;  %s365_s14 = scalar_lea.hbm %s509_s2, 2048 }
  0x24   :  { %s40_s11 = sshll.u32 %s419_s10, 4  ;;  %p366_p2 = scmp.ne.s32.totalorder %s509_s2, %s365_s14  ;;  %s41_s11 = int_to_ptr.vmem [resolvable:$true] %s40_s11 }
  0x25   :  { %p369_p3 = scmp.lt.u32.totalorder %s365_s14, %s509_s2 }
  0x27   :  { %p371_p4 = pnand %p369_p3, %p366_p2 }
  0x29   :  { %374 = shalt.err (!%p371_p4)
}
  0x2a   :  { %s375_s20 = scalar_lea.vmem %s41_s11, 2048  ;;  %p380_p6 = scmp.lt.s32.totalorder %s41_s11, %s41_s11 }
  0x2b   :  { %p376_p5 = scmp.ne.s32.totalorder %s41_s11, %s375_s20  ;;  %p381_p7 = scmp.lt.s32.totalorder %s375_s20, %s375_s20 }
  0x2d   :  { %p382_p8 = por %p381_p7, %p380_p6 }
  0x2f   :  { %p383_p9 = pnand %p382_p8, %p376_p5 }
  0x31   :  { %386 = shalt.err (!%p383_p9)
}
  0x32   :  { %46 = dma.hbm_to_vmem [thread:$0]  %s509_s2, 2048, %s41_s11, [#allocation6], %s417_s24, %s417_s24, %s418_s25  }
  0x33   :  { %409 = dma.done.wait [#allocation3], 2048  }
  0x34   :  { %410 = vsyncadd [#allocation3], 4294965248 }
  0x35   :  { %411 = dma.done.wait [#allocation6], 4096  }
  0x36   :  { %412 = vsyncadd [#allocation6], 4294963200  ;;  %v56_v0 = vld [vmem:[#allocation2] sm:$0xff]  ;;  %v57_v1 = vld [vmem:[#allocation2 + $0x8] sm:$0xff]  ;;  %s420_s2 = smov [#allocation8]  }
  0x37   :  { %v72_v2 = vld [vmem:[#allocation5] sm:$0xff]  ;;  %v73_v3 = vld [vmem:[#allocation5 + $0x8] sm:$0xff]  ;;  %v58_v8 = vld [vmem:[#allocation2 + $0x10] sm:$0xff]  ;;  %s221_s21 = sshll.u32 %s420_s2, 4  ;;  %s222_s21 = int_to_ptr.vmem [resolvable:$true] %s221_s21 }
  0x38   :  { %v88_v4 = vld [vmem:[#allocation7] sm:$0xff]  ;;  %v89_v5 = vld [vmem:[#allocation7 + $0x8] sm:$0xff]  ;;  %v59_v9 = vld [vmem:[#allocation2 + $0x18] sm:$0xff]  ;;  %s387_s22 = scalar_lea.vmem %s222_s21, 1024  ;;  %p392_p11 = scmp.lt.s32.totalorder %s222_s21, %s222_s21 }
  0x39   :  { %v104_v6 = vmul.f32 %v88_v4, %v72_v2  ;;  %v105_v7 = vmul.f32 %v89_v5, %v73_v3  ;;  %v74_v10 = vld [vmem:[#allocation5 + $0x10] sm:$0xff]  ;;  %v75_v11 = vld [vmem:[#allocation5 + $0x18] sm:$0xff]  ;;  %v60_v18 = vld [vmem:[#allocation2 + $0x20] sm:$0xff]  ;;  %p388_p10 = scmp.ne.s32.totalorder %s222_s21, %s387_s22  ;;  %p393_p12 = scmp.lt.s32.totalorder %s387_s22, %s387_s22 }
  0x3a   :  { %v90_v12 = vld [vmem:[#allocation7 + $0x10] sm:$0xff]  ;;  %v91_v13 = vld [vmem:[#allocation7 + $0x18] sm:$0xff]  ;;  %v61_v19 = vld [vmem:[#allocation2 + $0x28] sm:$0xff] }
  0x3b   :  { %v120_v14 = vadd.f32 %v104_v6, %v56_v0  ;;  %v121_v15 = vadd.f32 %v105_v7, %v57_v1  ;;  %v106_v16 = vmul.f32 %v90_v12, %v74_v10  ;;  %v107_v17 = vmul.f32 %v91_v13, %v75_v11  ;;  %v76_v20 = vld [vmem:[#allocation5 + $0x20] sm:$0xff]  ;;  %v77_v21 = vld [vmem:[#allocation5 + $0x28] sm:$0xff]  ;;  %v62_v28 = vld [vmem:[#allocation2 + $0x30] sm:$0xff]  ;;  %p394_p13 = por %p393_p12, %p392_p11 }
  0x3c   :  { %v92_v22 = vld [vmem:[#allocation7 + $0x20] sm:$0xff]  ;;  %v93_v23 = vld [vmem:[#allocation7 + $0x28] sm:$0xff]  ;;  %v63_v29 = vld [vmem:[#allocation2 + $0x38] sm:$0xff] }
  0x3d   :  { %v269_v24 = vpack.c.bf16 %v121_v15, %v120_v14  ;;  %v122_v25 = vadd.f32 %v106_v16, %v58_v8  ;;  %v123_v26 = vadd.f32 %v107_v17, %v59_v9  ;;  %v108_v27 = vmul.f32 %v92_v22, %v76_v20  ;;  %v78_v30 = vld [vmem:[#allocation5 + $0x30] sm:$0xff]  ;;  %v79_v32 = vld [vmem:[#allocation5 + $0x38] sm:$0xff]  ;;  %v64_v39 = vld [vmem:[#allocation2 + $0x40] sm:$0xff]  ;;  %p395_p0 = pnand %p394_p13, %p388_p10 }
  0x3e   :  { %v109_v31 = vmul.f32 %v93_v23, %v77_v21  ;;  %v94_v33 = vld [vmem:[#allocation7 + $0x30] sm:$0xff]  ;;  %v95_v34 = vld [vmem:[#allocation7 + $0x38] sm:$0xff]  ;;  %v65_v40 = vld [vmem:[#allocation2 + $0x48] sm:$0xff] }
  0x3f   :  { %270 = vst [vmem:[#allocation8] sm:$0xff] %v269_v24   ;;  %v274_v35 = vpack.c.bf16 %v123_v26, %v122_v25  ;;  %v124_v36 = vadd.f32 %v108_v27, %v60_v18  ;;  %v110_v37 = vmul.f32 %v94_v33, %v78_v30  ;;  %v111_v38 = vmul.f32 %v95_v34, %v79_v32  ;;  %v80_v41 = vld [vmem:[#allocation5 + $0x40] sm:$0xff]  ;;  %v81_v43 = vld [vmem:[#allocation5 + $0x48] sm:$0xff]  ;;  %v66_v50 = vld [vmem:[#allocation2 + $0x50] sm:$0xff] }
  0x40   :  { %v125_v42 = vadd.f32 %v109_v31, %v61_v19  ;;  %v96_v44 = vld [vmem:[#allocation7 + $0x40] sm:$0xff]  ;;  %v97_v45 = vld [vmem:[#allocation7 + $0x48] sm:$0xff]  ;;  %v67_v51 = vld [vmem:[#allocation2 + $0x58] sm:$0xff] }
  0x41   :  { %306 = vst [vmem:[#allocation8 + $0x8] sm:$0xff] %v274_v35   ;;  %v126_v46 = vadd.f32 %v110_v37, %v62_v28  ;;  %v127_v47 = vadd.f32 %v111_v38, %v63_v29  ;;  %v112_v48 = vmul.f32 %v96_v44, %v80_v41  ;;  %v113_v49 = vmul.f32 %v97_v45, %v81_v43  ;;  %v82_v52 = vld [vmem:[#allocation5 + $0x50] sm:$0xff]  ;;  %v83_v54 = vld [vmem:[#allocation5 + $0x58] sm:$0xff]  ;;  %v68_v61 = vld [vmem:[#allocation2 + $0x60] sm:$0xff] }
  0x42   :  { %v279_v53 = vpack.c.bf16 %v125_v42, %v124_v36  ;;  %v98_v55 = vld [vmem:[#allocation7 + $0x50] sm:$0xff]  ;;  %v99_v56 = vld [vmem:[#allocation7 + $0x58] sm:$0xff]  ;;  %v69_v62 = vld [vmem:[#allocation2 + $0x68] sm:$0xff] }
  0x43   :  { %v284_v57 = vpack.c.bf16 %v127_v47, %v126_v46  ;;  %v128_v58 = vadd.f32 %v112_v48, %v64_v39  ;;  %v129_v59 = vadd.f32 %v113_v49, %v65_v40  ;;  %v114_v60 = vmul.f32 %v98_v55, %v82_v52  ;;  %v84_v63 = vld [vmem:[#allocation5 + $0x60] sm:$0xff]  ;;  %v85_v1 = vld [vmem:[#allocation5 + $0x68] sm:$0xff]  ;;  %v70_v8 = vld [vmem:[#allocation2 + $0x70] sm:$0xff] }
  0x44   :  { %307 = vst [vmem:[#allocation8 + $0x10] sm:$0xff] %v279_v53   ;;  %v115_v0 = vmul.f32 %v99_v56, %v83_v54  ;;  %v100_v2 = vld [vmem:[#allocation7 + $0x60] sm:$0xff]  ;;  %v101_v3 = vld [vmem:[#allocation7 + $0x68] sm:$0xff]  ;;  %v71_v9 = vld [vmem:[#allocation2 + $0x78] sm:$0xff] }
  0x45   :  { %308 = vst [vmem:[#allocation8 + $0x18] sm:$0xff] %v284_v57   ;;  %v289_v4 = vpack.c.bf16 %v129_v59, %v128_v58  ;;  %v130_v5 = vadd.f32 %v114_v60, %v66_v50  ;;  %v116_v6 = vmul.f32 %v100_v2, %v84_v63  ;;  %v117_v7 = vmul.f32 %v101_v3, %v85_v1  ;;  %v86_v10 = vld [vmem:[#allocation5 + $0x70] sm:$0xff]  ;;  %v87_v12 = vld [vmem:[#allocation5 + $0x78] sm:$0xff] }
  0x46   :  { %v131_v11 = vadd.f32 %v115_v0, %v67_v51  ;;  %v102_v13 = vld [vmem:[#allocation7 + $0x70] sm:$0xff]  ;;  %v103_v14 = vld [vmem:[#allocation7 + $0x78] sm:$0xff] }
  0x47   :  { %309 = vst [vmem:[#allocation8 + $0x20] sm:$0xff] %v289_v4   ;;  %v132_v15 = vadd.f32 %v116_v6, %v68_v61  ;;  %v133_v16 = vadd.f32 %v117_v7, %v69_v62  ;;  %v118_v17 = vmul.f32 %v102_v13, %v86_v10  ;;  %v119_v18 = vmul.f32 %v103_v14, %v87_v12 }
  0x48   :  { %v294_v19 = vpack.c.bf16 %v131_v11, %v130_v5 }
  0x49   :  { %v299_v20 = vpack.c.bf16 %v133_v16, %v132_v15  ;;  %v134_v21 = vadd.f32 %v118_v17, %v70_v8  ;;  %v135_v22 = vadd.f32 %v119_v18, %v71_v9 }
  0x4a   :  { %310 = vst [vmem:[#allocation8 + $0x28] sm:$0xff] %v294_v19  }
  0x4b   :  { %311 = vst [vmem:[#allocation8 + $0x30] sm:$0xff] %v299_v20   ;;  %v304_v23 = vpack.c.bf16 %v135_v22, %v134_v21 }
  0x4d   :  { %312 = vst [vmem:[#allocation8 + $0x38] sm:$0xff] %v304_v23  }
  0x4e   :  { %398 = shalt.err (!%p395_p0)
}
  0x4f   :  { %s399_s25 = scalar_lea.hbm %s510_s3, 1024 }
  0x50   :  { %p400_p1 = scmp.ne.s32.totalorder %s510_s3, %s399_s25  ;;  %p403_p2 = scmp.lt.u32.totalorder %s399_s25, %s510_s3 }
  0x52   :  { %p405_p3 = pnand %p403_p2, %p400_p1 }
  0x54   :  { %408 = shalt.err (!%p405_p3)
}
  0x55   :  { %s421_s30 = smov 64   ;;  %s422_s4 = smov 4  }
  0x56   :  { %227 = dma.vmem_to_hbm [thread:$0]  %s222_s21, 1024, %s510_s3, [#allocation4], %s421_s30, %s421_s30, %s422_s4  }
  0x57   :  { %413 = dma.done.wait [#allocation4], 1024  }
  0x58   :  { %414 = vsyncadd [#allocation4], 4294966272 }
  0x59   :  { %231 = vsyncpa [#allocation3], 1 }
  0x5a   :  { %232 = vsyncpa [#allocation6], 1 }
  0x5b   :  { %233 = vsyncpa [#allocation4], 1 }

</bundles_post_ra>
